<compile_context>
chip_gen: v5e
topology: v5e:2x2
jax: 0.10.0
libtpu: 0.0.40
codegen_flags: <defaults>
</compile_context>

<pallas_src>
import functools

import jax
import jax.numpy as jnp
from jax.experimental import pallas as pl
from jax.experimental.pallas import tpu as pltpu


def _round_up(n: int, m: int) -> int:
    return ((n + m - 1) // m) * m


def qnet_kernel(x_ref, w1_ref, b1_ref, w2_ref, b2_ref, w3_ref, b3_ref, o_ref):
    """Fused 3-layer MLP forward on one (TM, S) batch tile.

    bf16 matmul inputs (MXU), f32 accumulation / bias add / ReLU (VPU),
    bf16 output store (writeback-bound => halve stored bytes).
    """
    x = x_ref[...]                                               # (TM, S) bf16

    h1 = jnp.dot(x, w1_ref[...], preferred_element_type=jnp.float32) + b1_ref[...]
    h1 = jnp.maximum(h1, 0.0)                                    # f32 ReLU

    h2 = jnp.dot(h1.astype(w2_ref.dtype), w2_ref[...],
                 preferred_element_type=jnp.float32) + b2_ref[...]
    h2 = jnp.maximum(h2, 0.0)                                    # f32 ReLU

    out = jnp.dot(h2.astype(w3_ref.dtype), w3_ref[...],
                  preferred_element_type=jnp.float32) + b3_ref[...]
    o_ref[...] = out.astype(o_ref.dtype)                         # bf16 store


@functools.partial(jax.jit, static_argnames=("tm",))
def qnetwork_forward(x, params, *, tm: int = 2048):
    """Run the fused Pallas kernel, gridded over the batch dimension."""
    w1, b1, w2, b2, w3, b3 = params
    batch, state_size = x.shape
    h1_dim = w1.shape[1]
    h2_dim = w2.shape[1]
    action_size = w3.shape[1]

    # ---- zero-pad hidden dims to a 128 lane grain (exact: ReLU(0)=0) --------
    h1_pad = _round_up(h1_dim, 128)
    h2_pad = _round_up(h2_dim, 128)
    if h1_pad != h1_dim:
        w1 = jnp.zeros((state_size, h1_pad), w1.dtype).at[:, :h1_dim].set(w1)
        b1 = jnp.zeros((1, h1_pad), b1.dtype).at[:, :h1_dim].set(b1)
        w2 = jnp.zeros((h1_pad, h2_dim), w2.dtype).at[:h1_dim, :].set(w2)
    if h2_pad != h2_dim:
        w2 = jnp.zeros((h1_pad, h2_pad), w2.dtype).at[:, :h2_dim].set(w2)
        b2 = jnp.zeros((1, h2_pad), b2.dtype).at[:, :h2_dim].set(b2)
        w3 = jnp.zeros((h2_pad, action_size), w3.dtype).at[:h2_dim, :].set(w3)

    # ---- batch tiling --------------------------------------------------------
    tm_req = max(128, _round_up(tm, 128))            # defensive (8,128) grain
    tm_eff = min(tm_req, _round_up(batch, 128))
    # Ensure >= 2 grid steps when tiles are big enough (v7x megacore; cheap on
    # v5e/v6e — one extra ~0.35us step).
    if _round_up(batch, tm_eff) == tm_eff and tm_eff >= 256:
        tm_eff //= 2
    b_pad = _round_up(batch, tm_eff)
    if b_pad != batch:
        x = jnp.zeros((b_pad, state_size), x.dtype).at[:batch].set(x)
    grid = (b_pad // tm_eff,)

    # ---- bf16 matmul inputs; f32 biases --------------------------------------
    cdt = jnp.bfloat16
    x_c = x.astype(cdt)
    w1_c, w2_c, w3_c = w1.astype(cdt), w2.astype(cdt), w3.astype(cdt)
    b1_f, b2_f, b3_f = (b1.astype(jnp.float32), b2.astype(jnp.float32),
                        b3.astype(jnp.float32))

    # Weights/biases: constant index_map -> DMA'd once, VMEM-resident.
    const = lambda i: (0, 0)
    in_specs = [
        pl.BlockSpec((tm_eff, state_size), lambda i: (i, 0)),   # x tile
        pl.BlockSpec((state_size, h1_pad), const),              # W1
        pl.BlockSpec((1, h1_pad), const),                       # b1
        pl.BlockSpec((h1_pad, h2_pad), const),                  # W2 (padded)
        pl.BlockSpec((1, h2_pad), const),                       # b2 (padded)
        pl.BlockSpec((h2_pad, action_size), const),             # W3 (padded rows)
        pl.BlockSpec((1, action_size), const),                  # b3
    ]
    out_spec = pl.BlockSpec((tm_eff, action_size), lambda i: (i, 0))

    flops = 2 * b_pad * (state_size * h1_pad + h1_pad * h2_pad
                         + h2_pad * action_size)
    bytes_accessed = (
        x_c.size * x_c.dtype.itemsize
        + sum(a.size * a.dtype.itemsize
              for a in (w1_c, w2_c, w3_c, b1_f, b2_f, b3_f))
        + b_pad * action_size * 2)                               # bf16 output

    # VMEM working-set estimate (double-buffered x/out, resident weights,
    # f32 intermediates); only raise the scoped limit when actually needed.
    est = (2 * tm_eff * state_size * 2            # x, 2 bufs, bf16
           + 2 * tm_eff * action_size * 2         # out, 2 bufs, bf16
           + 2 * (state_size * h1_pad + h1_pad * h2_pad + h2_pad * action_size)
           + 4 * (h1_pad + h2_pad + action_size)  # biases f32
           + 4 * tm_eff * (h1_pad + h2_pad))      # h1/h2 intermediates f32
    vmem_limit = None
    if est > 12 * 1024 * 1024:
        vmem_limit = min(int(est * 1.5), 60 * 1024 * 1024)

    out = pl.pallas_call(
        qnet_kernel,
        out_shape=jax.ShapeDtypeStruct((b_pad, action_size), jnp.bfloat16),
        grid=grid,
        in_specs=in_specs,
        out_specs=out_spec,
        compiler_params=pltpu.CompilerParams(
            dimension_semantics=("parallel",),     # megacore sharding on v7x
            vmem_limit_bytes=vmem_limit),
        cost_estimate=pl.CostEstimate(
            flops=flops, transcendentals=0, bytes_accessed=bytes_accessed),
    )(x_c, w1_c, b1_f, w2_c, b2_f, w3_c, b3_f)

    if b_pad != batch:
        out = out[:batch]                          # tiny (b_pad x action) slice
    return out                                     # bf16 Q-values


def init_params(key, state_size, action_size, hidden_layers=(128, 64)):
    """Deterministic init mimicking torch.nn.Linear default:
    U(-1/sqrt(fan_in), 1/sqrt(fan_in)) for weights and biases."""
    sizes = [state_size] + list(hidden_layers) + [action_size]
    params = []
    keys = jax.random.split(key, 2 * (len(sizes) - 1))
    for i in range(len(sizes) - 1):
        fan_in, fan_out = sizes[i], sizes[i + 1]
        bound = 1.0 / (fan_in ** 0.5)
        w = jax.random.uniform(
            keys[2 * i], (fan_in, fan_out), jnp.float32, minval=-bound, maxval=bound)
        b = jax.random.uniform(
            keys[2 * i + 1], (1, fan_out), jnp.float32, minval=-bound, maxval=bound)
        params.extend([w, b])
    return tuple(params)


def qnetwork_reference(x, params):
    """Pure-JAX reference mirroring the kernel's bf16-input / f32-accumulate
    numerics (inputs to each matmul quantized to bf16)."""
    w1, b1, w2, b2, w3, b3 = params
    q = lambda a: a.astype(jnp.bfloat16).astype(jnp.float32)
    h1 = jnp.maximum(q(x) @ q(w1) + b1, 0.0)
    h2 = jnp.maximum(q(h1) @ q(w2) + b2, 0.0)
    return q(h2) @ q(w3) + b3


if __name__ == "__main__":
    key = jax.random.PRNGKey(0)
    k_params, k_x, k_x2 = jax.random.split(key, 3)

    batch = 8
    state_size = 16
    action_size = 4
    hidden_layers = (128, 64)

    params = init_params(k_params, state_size, action_size, hidden_layers)
    x = jax.random.normal(k_x, (batch, state_size), jnp.float32)

    out = jax.block_until_ready(qnetwork_forward(x, params))
    ref = qnetwork_reference(x, params)
    assert out.shape == (batch, action_size)
    assert jnp.allclose(out.astype(jnp.float32), ref, atol=2e-2, rtol=2e-2), (
        float(jnp.max(jnp.abs(out.astype(jnp.float32) - ref))))

    # Exercise the multi-tile / padded-batch path as well.
    x2 = jax.random.normal(k_x2, (260, state_size), jnp.float32)
    out2 = jax.block_until_ready(qnetwork_forward(x2, params))
    ref2 = qnetwork_reference(x2, params)
    assert out2.shape == (260, action_size)
    assert jnp.allclose(out2.astype(jnp.float32), ref2, atol=2e-2, rtol=2e-2), (
        float(jnp.max(jnp.abs(out2.astype(jnp.float32) - ref2))))

    print("KERNEL_OK")
</pallas_src>

<mosaic_0001>
module attributes {stable_mosaic.version = 11 : i64} {
  func.func @qnet_kernel(%arg0: i32, %arg1: memref<128x16xbf16, #tpu.memory_space<vmem>>, %arg2: memref<16x128xbf16, #tpu.memory_space<vmem>>, %arg3: memref<1x128xf32, #tpu.memory_space<vmem>>, %arg4: memref<128x128xbf16, #tpu.memory_space<vmem>>, %arg5: memref<1x128xf32, #tpu.memory_space<vmem>>, %arg6: memref<128x4xbf16, #tpu.memory_space<vmem>>, %arg7: memref<1x4xf32, #tpu.memory_space<vmem>>, %arg8: memref<128x4xbf16, #tpu.memory_space<vmem>>) attributes {dimension_semantics = [#tpu.dimension_semantics<parallel>], iteration_bounds = array<i64: 1>, scalar_prefetch = 0 : i64, scratch_operands = 0 : i64, tpu.core_type = #tpu.core_type<tc>, window_params = [{transform_indices = @transform_0, window_bounds = array<i64: 128, 16>}, {pipeline_mode = #tpu.pipeline_mode<synchronous>, transform_indices = @transform_1, window_bounds = array<i64: 16, 128>}, {pipeline_mode = #tpu.pipeline_mode<synchronous>, transform_indices = @transform_2, window_bounds = array<i64: 1, 128>}, {pipeline_mode = #tpu.pipeline_mode<synchronous>, transform_indices = @transform_3, window_bounds = array<i64: 128, 128>}, {pipeline_mode = #tpu.pipeline_mode<synchronous>, transform_indices = @transform_4, window_bounds = array<i64: 1, 128>}, {pipeline_mode = #tpu.pipeline_mode<synchronous>, transform_indices = @transform_5, window_bounds = array<i64: 128, 4>}, {pipeline_mode = #tpu.pipeline_mode<synchronous>, transform_indices = @transform_6, window_bounds = array<i64: 1, 4>}, {transform_indices = @transform_7, window_bounds = array<i64: 128, 4>}]} {
    %c0 = arith.constant 0 : index
    %c0_0 = arith.constant 0 : index
    %0 = vector.load %arg1[%c0, %c0_0] : memref<128x16xbf16, #tpu.memory_space<vmem>>, vector<128x16xbf16>
    %c0_1 = arith.constant 0 : index
    %c0_2 = arith.constant 0 : index
    %1 = vector.load %arg2[%c0_1, %c0_2] : memref<16x128xbf16, #tpu.memory_space<vmem>>, vector<16x128xbf16>
    %cst = arith.constant dense<0.000000e+00> : vector<128x128xf32>
    %2 = tpu.matmul %0, %1, %cst {dimension_numbers = #tpu.dot_dimension_numbers<[1], [0], [0], [1], [0, 0, 1, 1], [], []>} : vector<128x16xbf16>, vector<16x128xbf16>, vector<128x128xf32> -> vector<128x128xf32>
    %c0_3 = arith.constant 0 : index
    %c0_4 = arith.constant 0 : index
    %3 = vector.load %arg3[%c0_3, %c0_4] : memref<1x128xf32, #tpu.memory_space<vmem>>, vector<1x128xf32>
    %4 = vector.broadcast %3 : vector<1x128xf32> to vector<128x128xf32>
    %5 = arith.addf %2, %4 : vector<128x128xf32>
    %cst_5 = arith.constant 0.000000e+00 : f32
    %6 = vector.broadcast %cst_5 : f32 to vector<128x128xf32>
    %7 = arith.maximumf %5, %6 : vector<128x128xf32>
    %8 = arith.truncf %7 : vector<128x128xf32> to vector<128x128xbf16>
    %c0_6 = arith.constant 0 : index
    %c0_7 = arith.constant 0 : index
    %9 = vector.load %arg4[%c0_6, %c0_7] : memref<128x128xbf16, #tpu.memory_space<vmem>>, vector<128x128xbf16>
    %cst_8 = arith.constant dense<0.000000e+00> : vector<128x128xf32>
    %10 = tpu.matmul %8, %9, %cst_8 {dimension_numbers = #tpu.dot_dimension_numbers<[1], [0], [0], [1], [0, 0, 1, 1], [], []>} : vector<128x128xbf16>, vector<128x128xbf16>, vector<128x128xf32> -> vector<128x128xf32>
    %c0_9 = arith.constant 0 : index
    %c0_10 = arith.constant 0 : index
    %11 = vector.load %arg5[%c0_9, %c0_10] : memref<1x128xf32, #tpu.memory_space<vmem>>, vector<1x128xf32>
    %12 = vector.broadcast %11 : vector<1x128xf32> to vector<128x128xf32>
    %13 = arith.addf %10, %12 : vector<128x128xf32>
    %cst_11 = arith.constant 0.000000e+00 : f32
    %14 = vector.broadcast %cst_11 : f32 to vector<128x128xf32>
    %15 = arith.maximumf %13, %14 : vector<128x128xf32>
    %16 = arith.truncf %15 : vector<128x128xf32> to vector<128x128xbf16>
    %c0_12 = arith.constant 0 : index
    %c0_13 = arith.constant 0 : index
    %17 = vector.load %arg6[%c0_12, %c0_13] : memref<128x4xbf16, #tpu.memory_space<vmem>>, vector<128x4xbf16>
    %cst_14 = arith.constant dense<0.000000e+00> : vector<128x4xf32>
    %18 = tpu.matmul %16, %17, %cst_14 {dimension_numbers = #tpu.dot_dimension_numbers<[1], [0], [0], [1], [0, 0, 1, 1], [], []>} : vector<128x128xbf16>, vector<128x4xbf16>, vector<128x4xf32> -> vector<128x4xf32>
    %c0_15 = arith.constant 0 : index
    %c0_16 = arith.constant 0 : index
    %19 = vector.load %arg7[%c0_15, %c0_16] : memref<1x4xf32, #tpu.memory_space<vmem>>, vector<1x4xf32>
    %20 = vector.broadcast %19 : vector<1x4xf32> to vector<128x4xf32>
    %21 = arith.addf %18, %20 : vector<128x4xf32>
    %22 = arith.truncf %21 : vector<128x4xf32> to vector<128x4xbf16>
    %c0_17 = arith.constant 0 : index
    %c0_18 = arith.constant 0 : index
    %23 = vector.load %arg8[%c0_17, %c0_18] : memref<128x4xbf16, #tpu.memory_space<vmem>>, vector<128x4xbf16>
    tpu.vector_store %arg8[%c0_17, %c0_18], %22 {strides = array<i32>} : memref<128x4xbf16, #tpu.memory_space<vmem>>, vector<128x4xbf16>,
    return
  }
  func.func @transform_0(%arg0: i32) -> (i32, i32) {
    %c0_i32 = arith.constant 0 : i32
    %c0_i32_0 = arith.constant 0 : i32
    return %arg0, %c0_i32 : i32, i32
  }
  func.func @transform_1(%arg0: i32) -> (i32, i32) {
    %c0_i32 = arith.constant 0 : i32
    %c0_i32_0 = arith.constant 0 : i32
    %c0_i32_1 = arith.constant 0 : i32
    return %c0_i32, %c0_i32_0 : i32, i32
  }
  func.func @transform_2(%arg0: i32) -> (i32, i32) {
    %c0_i32 = arith.constant 0 : i32
    %c0_i32_0 = arith.constant 0 : i32
    %c0_i32_1 = arith.constant 0 : i32
    return %c0_i32, %c0_i32_0 : i32, i32
  }
  func.func @transform_3(%arg0: i32) -> (i32, i32) {
    %c0_i32 = arith.constant 0 : i32
    %c0_i32_0 = arith.constant 0 : i32
    %c0_i32_1 = arith.constant 0 : i32
    return %c0_i32, %c0_i32_0 : i32, i32
  }
  func.func @transform_4(%arg0: i32) -> (i32, i32) {
    %c0_i32 = arith.constant 0 : i32
    %c0_i32_0 = arith.constant 0 : i32
    %c0_i32_1 = arith.constant 0 : i32
    return %c0_i32, %c0_i32_0 : i32, i32
  }
  func.func @transform_5(%arg0: i32) -> (i32, i32) {
    %c0_i32 = arith.constant 0 : i32
    %c0_i32_0 = arith.constant 0 : i32
    %c0_i32_1 = arith.constant 0 : i32
    return %c0_i32, %c0_i32_0 : i32, i32
  }
  func.func @transform_6(%arg0: i32) -> (i32, i32) {
    %c0_i32 = arith.constant 0 : i32
    %c0_i32_0 = arith.constant 0 : i32
    %c0_i32_1 = arith.constant 0 : i32
    return %c0_i32, %c0_i32_0 : i32, i32
  }
  func.func @transform_7(%arg0: i32) -> (i32, i32) {
    %c0_i32 = arith.constant 0 : i32
    %c0_i32_0 = arith.constant 0 : i32
    return %arg0, %c0_i32 : i32, i32
  }
}

</mosaic_0001>

<bundles_post_ra>
// kernel: qnetwork_forward.1
= control target key start
LH: loop header
LB: loop body
LE: loop exit
PB: predicated region body
PF: predicated region fallthrough
CT: control target
= control target key end

     0   :  { %vm95_vm0 = vcmask 130048   ;;  %vm467_vm1 = vcmask 27648   ;;  %s872_s1 = inlined_call_operand.vmem [shape: bf16[16,128], index: 1, kind: input, shape index: {}]   ;;  %s873_s0 = inlined_call_operand.vmem [shape: bf16[128,16], index: 0, kind: input, shape index: {}]   ;;  %s874_s2 = inlined_call_operand.vmem [shape: f32[1,128], index: 2, kind: input, shape index: {}]   ;;  %s875_s3 = inlined_call_operand.vmem [shape: bf16[128,128], index: 3, kind: input, shape index: {}]   ;;  %s876_s4 = inlined_call_operand.vmem [shape: f32[1,128], index: 4, kind: input, shape index: {}]   ;;  %s877_s5 = inlined_call_operand.vmem [shape: bf16[128,4], index: 5, kind: input, shape index: {}]   ;;  %s878_s6 = inlined_call_operand.vmem [shape: f32[1,4], index: 6, kind: input, shape index: {}]   ;;  %s879_s7 = inlined_call_operand.vmem [shape: bf16[128,4], index: 7, kind: output, shape index: {}]  }
   0x1   :  { %v604_v0 = vld [vmem:[%s872_s1] sm:$0xff]  ;;  %v597_v2 = vld [vmem:[%s873_s0 + $0x8] sm:$0xff]  ;;  %v598_v3 = vld [vmem:[%s873_s0 + $0x10] sm:$0xff] }
   0x2   :  { %v596_v1 = vld [vmem:[%s873_s0] sm:$0xff]  ;;  %127 = vmatpush.bf16.msra.mxu0 %v604_v0  ;;  %v599_v4 = vld [vmem:[%s873_s0 + $0x18] sm:$0xff]  ;;  %v601_v7 = vld [vmem:[%s873_s0 + $0x28] sm:$0xff] }
   0x3   :  { %v600_v5 = vld [vmem:[%s873_s0 + $0x20] sm:$0xff]  ;;  %v612_v6 = vld [vmem:[%s875_s3 + $0x38] sm:$0xff]  ;;  %v611_v8 = vld [vmem:[%s875_s3 + $0x30] sm:$0xff] }
   0x4   :  { %261 = vmatpush.bf16.msra.mxu1 %v612_v6  ;;  %621 = vmatpush.bf16.msra.mxu3 %v612_v6  ;;  %v610_v9 = vld [vmem:[%s875_s3 + $0x28] sm:$0xff]  ;;  %v609_v10 = vld [vmem:[%s875_s3 + $0x20] sm:$0xff]  ;;  %v608_v11 = vld [vmem:[%s875_s3 + $0x18] sm:$0xff] }
   0x5   :  { %524 = vmatmul.msk.bf16.vlgmr.msra.gmra.mxu0 %vm95_vm0, %v596_v1  ;;  %v602_v12 = vld [vmem:[%s873_s0 + $0x30] sm:$0xff]  ;;  %v606_v14 = vld [vmem:[%s875_s3 + $0x8] sm:$0xff]  ;;  %v605_v15 = vld [vmem:[%s875_s3] sm:$0xff] }
   0x6   :  { %v607_v13 = vld [vmem:[%s875_s3 + $0x10] sm:$0xff]  ;;  %v603_v16 = vld [vmem:[%s873_s0 + $0x38] sm:$0xff]  ;;  %v742_v18 = vld [vmem:[%s874_s2] ss:$0 sm:$0xff] }
   0x7   :  { %v620_v57 = vld [vmem:[%s877_s5 + $0x38] sm:$0xff]  ;;  %v619_v61 = vld [vmem:[%s877_s5 + $0x30] sm:$0xff]  ;;  %v618_v63 = vld [vmem:[%s877_s5 + $0x28] sm:$0xff] }
   0x8   :  { %262 = vmatpush.bf16.msra.mxu1 %v611_v8  ;;  %622 = vmatpush.bf16.msra.mxu3 %v611_v8  ;;  %v617_v0 = vld [vmem:[%s877_s5 + $0x20] sm:$0xff]  ;;  %v615_v8 = vld [vmem:[%s877_s5 + $0x10] sm:$0xff] }
   0x9   :  { %402 = vmatpush.bf16.msra.mxu2 %v620_v57 }
   0xc   :  { %263 = vmatpush.bf16.msra.mxu1 %v610_v9  ;;  %623 = vmatpush.bf16.msra.mxu3 %v610_v9 }
   0xd   :  { %403 = vmatpush.bf16.msra.mxu2 %v619_v61 }
  0x10   :  { %264 = vmatpush.bf16.msra.mxu1 %v609_v10  ;;  %624 = vmatpush.bf16.msra.mxu3 %v609_v10  ;;  %v614_v10 = vld [vmem:[%s877_s5 + $0x8] sm:$0xff] }
  0x11   :  { %404 = vmatpush.bf16.msra.mxu2 %v618_v63 }
  0x14   :  { %265 = vmatpush.bf16.msra.mxu1 %v608_v11  ;;  %625 = vmatpush.bf16.msra.mxu3 %v608_v11  ;;  %v613_v11 = vld [vmem:[%s877_s5] sm:$0xff] }
  0x15   :  { %525 = vmatmul.msk.bf16.gmra.mxu0 %vm95_vm0, %v597_v2  ;;  %405 = vmatpush.bf16.msra.mxu2 %v617_v0 }
  0x18   :  { %266 = vmatpush.bf16.msra.mxu1 %v607_v13  ;;  %626 = vmatpush.bf16.msra.mxu3 %v607_v13 }
  0x1c   :  { %267 = vmatpush.bf16.msra.mxu1 %v606_v14  ;;  %627 = vmatpush.bf16.msra.mxu3 %v606_v14 }
  0x20   :  { %268 = vmatpush.bf16.msra.mxu1 %v605_v15  ;;  %628 = vmatpush.bf16.msra.mxu3 %v605_v15 }
  0x24   :  { %629 = vmatpush.bf16.msrb.mxu3 %v620_v57 }
  0x25   :  { %526 = vmatmul.msk.bf16.gmra.mxu0 %vm95_vm0, %v598_v3 }
  0x28   :  { %630 = vmatpush.bf16.msrb.mxu3 %v619_v61 }
  0x2c   :  { %631 = vmatpush.bf16.msrb.mxu3 %v618_v63 }
  0x30   :  { %632 = vmatpush.bf16.msrb.mxu3 %v617_v0 }
  0x35   :  { %527 = vmatmul.msk.bf16.gmra.mxu0 %vm95_vm0, %v599_v4  ;;  %v616_v4 = vld [vmem:[%s877_s5 + $0x18] sm:$0xff] }
  0x36   :  { %406 = vmatpush.bf16.msra.mxu2 %v616_v4  ;;  %633 = vmatpush.bf16.msrb.mxu3 %v616_v4 }
  0x3a   :  { %407 = vmatpush.bf16.msra.mxu2 %v615_v8  ;;  %634 = vmatpush.bf16.msrb.mxu3 %v615_v8 }
  0x3e   :  { %408 = vmatpush.bf16.msra.mxu2 %v614_v10  ;;  %635 = vmatpush.bf16.msrb.mxu3 %v614_v10 }
  0x42   :  { %409 = vmatpush.bf16.msra.mxu2 %v613_v11  ;;  %636 = vmatpush.bf16.msrb.mxu3 %v613_v11  ;;  %v790_v11 = vld [vmem:[%s878_s6] ss:$0 sm:$0xff] }
  0x45   :  { %528 = vmatmul.msk.bf16.gmra.mxu0 %vm95_vm0, %v600_v5 }
  0x55   :  { %529 = vmatmul.msk.bf16.gmra.mxu0 %vm95_vm0, %v601_v7 }
  0x65   :  { %530 = vmatmul.msk.bf16.gmra.mxu0 %vm95_vm0, %v602_v12 }
  0x75   :  { %531 = vmatmul.msk.bf16.gmra.mxu0 %vm95_vm0, %v603_v16 }
  0x82   :  { %v129_v17 = vpop.f32.mrf.mxu0 }
  0x83   :  { %v130_v19 = vadd.f32 %v742_v18, %v129_v17 }
  0x85   :  { %v169_v22 = vmax.f32 %v130_v19, 0.0 }
  0x8a   :  { %v131_v20 = vpop.f32.mrf.mxu0 }
  0x8b   :  { %v132_v21 = vadd.f32 %v742_v18, %v131_v20  ;;  %v638_v20 = vld [vmem:[%s876_s4] ss:$0 sm:$0xff] }
  0x8d   :  { %v170_v23 = vmax.f32 %v132_v21, 0.0 }
  0x8f   :  { %v185_v24 = vpack.c.bf16 %v170_v23, %v169_v22 }
  0x91   :  { %269 = vmatmul.bf16.vlgmr.msra.gmra.mxu1 %v185_v24 }
  0x92   :  { %v134_v25 = vpop.f32.mrf.mxu0 }
  0x93   :  { %v135_v26 = vadd.f32 %v742_v18, %v134_v25 }
  0x95   :  { %v171_v29 = vmax.f32 %v135_v26, 0.0 }
  0x9a   :  { %v136_v27 = vpop.f32.mrf.mxu0 }
  0x9b   :  { %v137_v28 = vadd.f32 %v742_v18, %v136_v27 }
  0x9d   :  { %v172_v30 = vmax.f32 %v137_v28, 0.0 }
  0x9f   :  { %v186_v31 = vpack.c.bf16 %v172_v30, %v171_v29 }
  0xa1   :  { %274 = vmatmul.bf16.gmra.mxu1 %v186_v31 }
  0xa2   :  { %v139_v32 = vpop.f32.mrf.mxu0 }
  0xa3   :  { %v140_v33 = vadd.f32 %v742_v18, %v139_v32 }
  0xa5   :  { %v173_v36 = vmax.f32 %v140_v33, 0.0 }
  0xaa   :  { %v141_v34 = vpop.f32.mrf.mxu0 }
  0xab   :  { %v142_v35 = vadd.f32 %v742_v18, %v141_v34 }
  0xad   :  { %v174_v37 = vmax.f32 %v142_v35, 0.0 }
  0xaf   :  { %v187_v38 = vpack.c.bf16 %v174_v37, %v173_v36 }
  0xb1   :  { %279 = vmatmul.bf16.gmra.mxu1 %v187_v38 }
  0xb2   :  { %v144_v39 = vpop.f32.mrf.mxu0 }
  0xb3   :  { %v145_v40 = vadd.f32 %v742_v18, %v144_v39 }
  0xb5   :  { %v175_v43 = vmax.f32 %v145_v40, 0.0 }
  0xba   :  { %v146_v41 = vpop.f32.mrf.mxu0 }
  0xbb   :  { %v147_v42 = vadd.f32 %v742_v18, %v146_v41 }
  0xbd   :  { %v176_v44 = vmax.f32 %v147_v42, 0.0 }
  0xbf   :  { %v188_v45 = vpack.c.bf16 %v176_v44, %v175_v43 }
  0xc1   :  { %284 = vmatmul.bf16.gmra.mxu1 %v188_v45 }
  0xc2   :  { %v149_v46 = vpop.f32.mrf.mxu0 }
  0xc3   :  { %v150_v47 = vadd.f32 %v742_v18, %v149_v46 }
  0xc5   :  { %v177_v50 = vmax.f32 %v150_v47, 0.0 }
  0xca   :  { %v151_v48 = vpop.f32.mrf.mxu0 }
  0xcb   :  { %v152_v49 = vadd.f32 %v742_v18, %v151_v48 }
  0xcd   :  { %v178_v51 = vmax.f32 %v152_v49, 0.0 }
  0xcf   :  { %v189_v52 = vpack.c.bf16 %v178_v51, %v177_v50 }
  0xd1   :  { %289 = vmatmul.bf16.gmra.mxu1 %v189_v52 }
  0xd2   :  { %v154_v53 = vpop.f32.mrf.mxu0 }
  0xd3   :  { %v155_v54 = vadd.f32 %v742_v18, %v154_v53 }
  0xd5   :  { %v179_v58 = vmax.f32 %v155_v54, 0.0 }
  0xda   :  { %v156_v55 = vpop.f32.mrf.mxu0 }
  0xdb   :  { %v157_v56 = vadd.f32 %v742_v18, %v156_v55 }
  0xdd   :  { %v180_v59 = vmax.f32 %v157_v56, 0.0 }
  0xdf   :  { %v190_v60 = vpack.c.bf16 %v180_v59, %v179_v58 }
  0xe1   :  { %294 = vmatmul.bf16.gmra.mxu1 %v190_v60 }
  0xe2   :  { %v159_v62 = vpop.f32.mrf.mxu0 }
  0xe3   :  { %v160_v1 = vadd.f32 %v742_v18, %v159_v62 }
  0xe5   :  { %v181_v5 = vmax.f32 %v160_v1, 0.0 }
  0xea   :  { %v161_v2 = vpop.f32.mrf.mxu0 }
  0xeb   :  { %v162_v3 = vadd.f32 %v742_v18, %v161_v2 }
  0xed   :  { %v182_v6 = vmax.f32 %v162_v3, 0.0 }
  0xef   :  { %v191_v7 = vpack.c.bf16 %v182_v6, %v181_v5 }
  0xf1   :  { %299 = vmatmul.bf16.vlgmr.msra.gmra.mxu3 %v191_v7 }
  0xf2   :  { %v164_v9 = vpop.f32.mrf.mxu0 }
  0xf3   :  { %v165_v12 = vadd.f32 %v742_v18, %v164_v9 }
  0xf5   :  { %v183_v15 = vmax.f32 %v165_v12, 0.0 }
  0xfa   :  { %v166_v13 = vpop.f32.mrf.mxu0 }
  0xfb   :  { %v167_v14 = vadd.f32 %v742_v18, %v166_v13 }
  0xfd   :  { %v184_v16 = vmax.f32 %v167_v14, 0.0 }
  0xff   :  { %v192_v17 = vpack.c.bf16 %v184_v16, %v183_v15 }
 0x101   :  { %304 = vmatmul.bf16.gmra.mxu3 %v192_v17 }
 0x10e   :  { %v270_v19 = vpop.f32.mrf.mxu1 }
 0x10f   :  { %v271_v21 = vadd.f32 %v638_v20, %v270_v19 }
 0x111   :  { %v310_v24 = vmax.f32 %v271_v21, 0.0 }
 0x116   :  { %v272_v22 = vpop.f32.mrf.mxu1 }
 0x117   :  { %v273_v23 = vadd.f32 %v638_v20, %v272_v22 }
 0x119   :  { %v311_v25 = vmax.f32 %v273_v23, 0.0 }
 0x11b   :  { %v326_v26 = vpack.c.bf16 %v311_v25, %v310_v24 }
 0x11d   :  { %410 = vmatmul.bf16.vlgmr.msra.gmra.mxu2 %v326_v26 }
 0x11e   :  { %v275_v27 = vpop.f32.mrf.mxu1 }
 0x11f   :  { %v276_v28 = vadd.f32 %v638_v20, %v275_v27 }
 0x121   :  { %v312_v30 = vmax.f32 %v276_v28, 0.0 }
 0x126   :  { %v277_v29 = vpop.f32.mrf.mxu1 }
 0x127   :  { %v278_v18 = vadd.f32 %v638_v20, %v277_v29 }
 0x129   :  { %v313_v31 = vmax.f32 %v278_v18, 0.0 }
 0x12b   :  { %v327_v32 = vpack.c.bf16 %v313_v31, %v312_v30 }
 0x12d   :  { %415 = vmatmul.bf16.gmra.mxu2 %v327_v32 }
 0x12e   :  { %v280_v33 = vpop.f32.mrf.mxu1 }
 0x12f   :  { %v281_v34 = vadd.f32 %v638_v20, %v280_v33 }
 0x131   :  { %v314_v37 = vmax.f32 %v281_v34, 0.0 }
 0x136   :  { %v282_v35 = vpop.f32.mrf.mxu1 }
 0x137   :  { %v283_v36 = vadd.f32 %v638_v20, %v282_v35 }
 0x139   :  { %v315_v38 = vmax.f32 %v283_v36, 0.0 }
 0x13b   :  { %v328_v39 = vpack.c.bf16 %v315_v38, %v314_v37 }
 0x13d   :  { %420 = vmatmul.bf16.gmra.mxu2 %v328_v39 }
 0x13e   :  { %v285_v40 = vpop.f32.mrf.mxu1 }
 0x13f   :  { %v286_v41 = vadd.f32 %v638_v20, %v285_v40 }
 0x141   :  { %v316_v44 = vmax.f32 %v286_v41, 0.0 }
 0x146   :  { %v287_v42 = vpop.f32.mrf.mxu1 }
 0x147   :  { %v288_v43 = vadd.f32 %v638_v20, %v287_v42 }
 0x149   :  { %v317_v45 = vmax.f32 %v288_v43, 0.0 }
 0x14b   :  { %v329_v46 = vpack.c.bf16 %v317_v45, %v316_v44 }
 0x14d   :  { %425 = vmatmul.bf16.gmra.mxu2 %v329_v46 }
 0x14e   :  { %v290_v47 = vpop.f32.mrf.mxu1 }
 0x14f   :  { %v291_v48 = vadd.f32 %v638_v20, %v290_v47 }
 0x151   :  { %v318_v51 = vmax.f32 %v291_v48, 0.0 }
 0x156   :  { %v292_v49 = vpop.f32.mrf.mxu1 }
 0x157   :  { %v293_v50 = vadd.f32 %v638_v20, %v292_v49 }
 0x159   :  { %v319_v52 = vmax.f32 %v293_v50, 0.0 }
 0x15b   :  { %v330_v53 = vpack.c.bf16 %v319_v52, %v318_v51 }
 0x15d   :  { %430 = vmatmul.bf16.gmra.mxu2 %v330_v53 }
 0x15e   :  { %v295_v54 = vpop.f32.mrf.mxu1 }
 0x15f   :  { %v296_v55 = vadd.f32 %v638_v20, %v295_v54 }
 0x161   :  { %v320_v58 = vmax.f32 %v296_v55, 0.0 }
 0x166   :  { %v297_v56 = vpop.f32.mrf.mxu1 }
 0x167   :  { %v298_v57 = vadd.f32 %v638_v20, %v297_v56 }
 0x169   :  { %v321_v59 = vmax.f32 %v298_v57, 0.0 }
 0x16b   :  { %v331_v60 = vpack.c.bf16 %v321_v59, %v320_v58 }
 0x16d   :  { %435 = vmatmul.bf16.gmra.mxu2 %v331_v60 }
 0x174   :  { %v300_v61 = vpop.f32.mrf.mxu3 }
 0x175   :  { %v301_v62 = vadd.f32 %v638_v20, %v300_v61 }
 0x177   :  { %v322_v1 = vmax.f32 %v301_v62, 0.0 }
 0x17c   :  { %v302_v63 = vpop.f32.mrf.mxu3 }
 0x17d   :  { %v303_v0 = vadd.f32 %v638_v20, %v302_v63 }
 0x17f   :  { %v323_v2 = vmax.f32 %v303_v0, 0.0 }
 0x181   :  { %v332_v3 = vpack.c.bf16 %v323_v2, %v322_v1 }
 0x183   :  { %440 = vmatmul.bf16.vlgmr.msrb.gmra.mxu3 %v332_v3 }
 0x184   :  { %v305_v4 = vpop.f32.mrf.mxu3 }
 0x185   :  { %v306_v5 = vadd.f32 %v638_v20, %v305_v4 }
 0x187   :  { %v324_v8 = vmax.f32 %v306_v5, 0.0 }
 0x18c   :  { %v307_v6 = vpop.f32.mrf.mxu3 }
 0x18d   :  { %v308_v7 = vadd.f32 %v638_v20, %v307_v6 }
 0x18f   :  { %v325_v9 = vmax.f32 %v308_v7, 0.0 }
 0x191   :  { %v333_v10 = vpack.c.bf16 %v325_v9, %v324_v8 }
 0x193   :  { %445 = vmatmul.bf16.gmra.mxu3 %v333_v10 }
 0x1a0   :  { %v411_v12 = vpop.f32.mrf.mxu2 }
 0x1a1   :  { %v412_v13 = vadd.f32 %v790_v11, %v411_v12 }
 0x1a3   :  { %v451_v14 = vpack.c.bf16 %v412_v13, %v412_v13 }
 0x1a5   :  { %468 = vst.msk [vmem:[%s879_s7] sm:$0xf] %vm467_vm1, %v451_v14 }
 0x1a8   :  { %v413_v15 = vpop.f32.mrf.mxu2 }
 0x1a9   :  { %v414_v16 = vadd.f32 %v790_v11, %v413_v15 }
 0x1ab   :  { %v452_v17 = vpack.c.bf16 %v414_v16, %v414_v16 }
 0x1ad   :  { %469 = vst.msk [vmem:[%s879_s7 + $0x4] sm:$0xf] %vm467_vm1, %v452_v17 }
 0x1b0   :  { %v416_v19 = vpop.f32.mrf.mxu2 }
 0x1b1   :  { %v417_v20 = vadd.f32 %v790_v11, %v416_v19 }
 0x1b3   :  { %v453_v21 = vpack.c.bf16 %v417_v20, %v417_v20 }
 0x1b5   :  { %470 = vst.msk [vmem:[%s879_s7 + $0x8] sm:$0xf] %vm467_vm1, %v453_v21 }
 0x1b8   :  { %v418_v22 = vpop.f32.mrf.mxu2 }
 0x1b9   :  { %v419_v23 = vadd.f32 %v790_v11, %v418_v22 }
 0x1bb   :  { %v454_v24 = vpack.c.bf16 %v419_v23, %v419_v23 }
 0x1bd   :  { %471 = vst.msk [vmem:[%s879_s7 + $0xc] sm:$0xf] %vm467_vm1, %v454_v24 }
 0x1c0   :  { %v421_v25 = vpop.f32.mrf.mxu2 }
 0x1c1   :  { %v422_v26 = vadd.f32 %v790_v11, %v421_v25 }
 0x1c3   :  { %v455_v27 = vpack.c.bf16 %v422_v26, %v422_v26 }
 0x1c5   :  { %472 = vst.msk [vmem:[%s879_s7 + $0x10] sm:$0xf] %vm467_vm1, %v455_v27 }
 0x1c8   :  { %v423_v28 = vpop.f32.mrf.mxu2 }
 0x1c9   :  { %v424_v29 = vadd.f32 %v790_v11, %v423_v28 }
 0x1cb   :  { %v456_v18 = vpack.c.bf16 %v424_v29, %v424_v29 }
 0x1cd   :  { %473 = vst.msk [vmem:[%s879_s7 + $0x14] sm:$0xf] %vm467_vm1, %v456_v18 }
 0x1d0   :  { %v426_v30 = vpop.f32.mrf.mxu2 }
 0x1d1   :  { %v427_v31 = vadd.f32 %v790_v11, %v426_v30 }
 0x1d3   :  { %v457_v32 = vpack.c.bf16 %v427_v31, %v427_v31 }
 0x1d5   :  { %474 = vst.msk [vmem:[%s879_s7 + $0x18] sm:$0xf] %vm467_vm1, %v457_v32 }
 0x1d8   :  { %v428_v33 = vpop.f32.mrf.mxu2 }
 0x1d9   :  { %v429_v34 = vadd.f32 %v790_v11, %v428_v33 }
 0x1db   :  { %v458_v35 = vpack.c.bf16 %v429_v34, %v429_v34 }
 0x1dd   :  { %475 = vst.msk [vmem:[%s879_s7 + $0x1c] sm:$0xf] %vm467_vm1, %v458_v35 }
 0x1e0   :  { %v431_v36 = vpop.f32.mrf.mxu2 }
 0x1e1   :  { %v432_v37 = vadd.f32 %v790_v11, %v431_v36 }
 0x1e3   :  { %v459_v38 = vpack.c.bf16 %v432_v37, %v432_v37 }
 0x1e5   :  { %476 = vst.msk [vmem:[%s879_s7 + $0x20] sm:$0xf] %vm467_vm1, %v459_v38 }
 0x1e8   :  { %v433_v39 = vpop.f32.mrf.mxu2 }
 0x1e9   :  { %v434_v40 = vadd.f32 %v790_v11, %v433_v39 }
 0x1eb   :  { %v460_v41 = vpack.c.bf16 %v434_v40, %v434_v40 }
 0x1ed   :  { %477 = vst.msk [vmem:[%s879_s7 + $0x24] sm:$0xf] %vm467_vm1, %v460_v41 }
 0x1f0   :  { %v436_v42 = vpop.f32.mrf.mxu2 }
 0x1f1   :  { %v437_v43 = vadd.f32 %v790_v11, %v436_v42 }
 0x1f3   :  { %v461_v44 = vpack.c.bf16 %v437_v43, %v437_v43 }
 0x1f5   :  { %478 = vst.msk [vmem:[%s879_s7 + $0x28] sm:$0xf] %vm467_vm1, %v461_v44 }
 0x1f8   :  { %v438_v45 = vpop.f32.mrf.mxu2 }
 0x1f9   :  { %v439_v46 = vadd.f32 %v790_v11, %v438_v45 }
 0x1fb   :  { %v462_v47 = vpack.c.bf16 %v439_v46, %v439_v46 }
 0x1fd   :  { %479 = vst.msk [vmem:[%s879_s7 + $0x2c] sm:$0xf] %vm467_vm1, %v462_v47 }
 0x206   :  { %v441_v48 = vpop.f32.mrf.mxu3 }
 0x207   :  { %v442_v49 = vadd.f32 %v790_v11, %v441_v48 }
 0x209   :  { %v463_v50 = vpack.c.bf16 %v442_v49, %v442_v49 }
 0x20b   :  { %480 = vst.msk [vmem:[%s879_s7 + $0x30] sm:$0xf] %vm467_vm1, %v463_v50 }
 0x20e   :  { %v443_v51 = vpop.f32.mrf.mxu3 }
 0x20f   :  { %v444_v52 = vadd.f32 %v790_v11, %v443_v51 }
 0x211   :  { %v464_v53 = vpack.c.bf16 %v444_v52, %v444_v52 }
 0x213   :  { %481 = vst.msk [vmem:[%s879_s7 + $0x34] sm:$0xf] %vm467_vm1, %v464_v53 }
 0x216   :  { %v446_v54 = vpop.f32.mrf.mxu3 }
 0x217   :  { %v447_v55 = vadd.f32 %v790_v11, %v446_v54 }
 0x219   :  { %v465_v56 = vpack.c.bf16 %v447_v55, %v447_v55 }
 0x21b   :  { %482 = vst.msk [vmem:[%s879_s7 + $0x38] sm:$0xf] %vm467_vm1, %v465_v56 }
 0x21e   :  { %v448_v57 = vpop.f32.mrf.mxu3 }
 0x21f   :  { %v449_v58 = vadd.f32 %v790_v11, %v448_v57 }
 0x221   :  { %v466_v59 = vpack.c.bf16 %v449_v58, %v449_v58 }
 0x223   :  { %483 = vst.msk [vmem:[%s879_s7 + $0x3c] sm:$0xf] %vm467_vm1, %v466_v59 }

</bundles_post_ra>
